<compile_context>
chip_gen: v5e
topology: v5e:2x2
jax: 0.10.0
libtpu: 0.0.40
codegen_flags: <defaults>
</compile_context>

<pallas_src>
import jax
import jax.numpy as jnp
import numpy as np
from jax.experimental import pallas as pl
from jax.experimental.pallas import tpu as pltpu


# ----------------------------------------------------------------------------
# Kernels
# ----------------------------------------------------------------------------
def _fused_kernel(taps_ref, x_ref, o_ref):
    """One batch resident in VMEM: spatial sums + k-tap gate + multiply."""
    k = taps_ref.shape[0]                       # static
    pad = (k - 1) // 2
    # Per-channel spatial sums, accumulated in f32.   (C, 1)
    sums = jnp.sum(x_ref[0].astype(jnp.float32), axis=-1, keepdims=True)
    c = sums.shape[0]
    p = sums
    if pad > 0:                                 # zero padding at channel edges
        z = jnp.zeros((pad, 1), jnp.float32)
        p = jnp.concatenate([z, p, z], axis=0)
    acc = taps_ref[0] * p[0:c, :]
    for d in range(1, k):                       # k tiny & static -> unrolled
        acc = acc + taps_ref[d] * p[d:d + c, :]
    gate = jax.nn.sigmoid(acc)                  # (C, 1) f32, EUP slot
    # Multiply in the I/O dtype (exact for f32; within bf16 tolerance).
    o_ref[0] = x_ref[0] * gate.astype(o_ref.dtype)


def _pool_kernel(x_ref, psum_ref):
    """Accumulate per-channel spatial sums (f32) for one (b, c-tile) block."""
    @pl.when(pl.program_id(2) == 0)
    def _():
        psum_ref[...] = jnp.zeros_like(psum_ref)
    s = jnp.sum(x_ref[0].astype(jnp.float32), axis=-1, keepdims=True)  # (tc,1)
    psum_ref[...] += s[None]


def _apply_kernel(taps_ref, x_ref, pooled_ref, o_ref, gate_ref):
    """out = x * gate; gate (k-tap conv + sigmoid over the pooled sums) is
    recomputed into a VMEM scratch once per (b, c-tile) at hw step 0."""
    k = taps_ref.shape[0]                       # static
    pad = (k - 1) // 2
    tc = x_ref.shape[1]                         # static channel-tile size

    @pl.when(pl.program_id(2) == 0)
    def _():
        p = pooled_ref[0]                       # (C, 1) f32 spatial sums
        c = p.shape[0]
        if pad > 0:
            z = jnp.zeros((pad, 1), jnp.float32)
            p = jnp.concatenate([z, p, z], axis=0)
        acc = taps_ref[0] * p[0:c, :]
        for d in range(1, k):
            acc = acc + taps_ref[d] * p[d:d + c, :]
        gate_ref[0] = jax.nn.sigmoid(acc)       # full-C gate, f32

    start = pl.multiple_of(pl.program_id(1) * tc, 8)
    g = gate_ref[0, pl.ds(start, tc)]           # (tc, 1) f32 slice of scratch
    o_ref[0] = x_ref[0] * g.astype(o_ref.dtype)


# ----------------------------------------------------------------------------
# Sizing helpers
# ----------------------------------------------------------------------------
def _vmem_budget_bytes():
    """Per-core VMEM capacity estimate (conservative when unknown)."""
    kind = ""
    try:
        kind = jax.devices()[0].device_kind.lower()
    except Exception:
        pass
    if any(s in kind for s in ("v4", "v5", "v6", "trillium")):
        return 128 << 20          # v4 / v5e / v5p / v6e: 128 MiB per core
    return 64 << 20               # v7x (64 MiB per TensorCore) / unknown


def _largest_aligned_divisor(n, quantum, cap):
    """Largest t <= cap with t % quantum == 0 and n % t == 0 (0 if none)."""
    t = (min(cap, n) // quantum) * quantum
    while t >= quantum:
        if n % t == 0:
            return t
        t -= quantum
    return 0


# ----------------------------------------------------------------------------
# Forward
# ----------------------------------------------------------------------------
def eca_forward(x, conv_w, k_size=3, *, force_streaming=False,
                block_cap_bytes=None, vmem_limit_bytes=None):
    """x: (B, C, H, W) float32/bfloat16; conv_w: (k_size,) -> same shape/dtype."""
    B, C, H, W = x.shape
    HW = H * W
    x_flat = x.reshape(B, C, HW)
    itemsize = x.dtype.itemsize

    # Fold the 1/HW of the average pool into the conv taps (f32); the kernels
    # then only ever need spatial *sums*.
    taps = (conv_w.astype(jnp.float32) / jnp.float32(HW)).reshape(-1)
    assert taps.shape[0] == k_size

    budget = _vmem_budget_bytes()
    vmem_limit = vmem_limit_bytes or (3 * budget) // 4      # 48 MiB v7x, 96 MiB v5e/v6e
    block_cap = block_cap_bytes or max(2 << 20, vmem_limit // 12)  # ~4 / ~8 MiB

    slab = C * HW * itemsize                 # one batch's (C, HW) slab
    slab_f32 = C * HW * 4
    # in + out (double-buffered) + headroom for in-kernel f32 temporaries.
    fused_need = 4 * slab + 3 * slab_f32 + (2 << 20)

    # ------------------------------------------------------------------ fused
    if (not force_streaming) and fused_need <= vmem_limit:
        out_flat = pl.pallas_call(
            _fused_kernel,
            out_shape=jax.ShapeDtypeStruct((B, C, HW), x.dtype),
            grid_spec=pltpu.PrefetchScalarGridSpec(
                num_scalar_prefetch=0,
                grid=(B,),
                in_specs=[pl.BlockSpec(memory_space=pltpu.MemorySpace.SMEM),
                          pl.BlockSpec((1, C, HW), lambda b: (b, 0, 0))],
                out_specs=pl.BlockSpec((1, C, HW), lambda b: (b, 0, 0)),
            ),
            compiler_params=pltpu.CompilerParams(
                dimension_semantics=("parallel",),
                vmem_limit_bytes=vmem_limit),
        )(taps, x_flat)
        return out_flat.reshape(B, C, H, W)

    # -------------------------------------------------------------- streaming
    cap_elems = max(1024, block_cap // itemsize)
    thw_cap = max(128, cap_elems // 8)       # leave room for >= 8 sublanes
    if HW <= thw_cap:
        thw = HW                              # full-dim block (always legal)
    else:
        thw = _largest_aligned_divisor(HW, 128, thw_cap)
        if thw == 0:
            thw = HW                          # no lane-aligned divisor: full dim
    max_tc = max(1, cap_elems // thw)
    if C % 8 == 0:
        tc = _largest_aligned_divisor(C, 8, max(8, max_tc))  # >= 8 always works
    else:
        tc = C                                # full-dim exemption
    n_c = C // tc
    n_hw = HW // thw

    # Keep both v7x TensorCores fed when the parallel work units are tiny.
    if B * n_c < 2 and tc % 16 == 0:
        tc //= 2
        n_c = C // tc

    block_bytes = tc * thw * itemsize
    # x in/out double-buffered + pooled + gate scratch + per-step temporaries.
    approx_need = 4 * block_bytes + 2 * tc * thw * 4 + 4 * C * 4 + (1 << 20)
    if approx_need > vmem_limit:
        raise ValueError(
            f"eca_forward: no VMEM-feasible tiling for shape {x.shape} "
            f"(block {tc}x{thw}, ~{approx_need >> 20} MiB needed, "
            f"limit {vmem_limit >> 20} MiB)")

    # 1) Per-channel spatial sums, accumulated in f32 across HW tiles.
    pooled = pl.pallas_call(
        _pool_kernel,
        out_shape=jax.ShapeDtypeStruct((B, C, 1), jnp.float32),
        grid_spec=pltpu.PrefetchScalarGridSpec(
            num_scalar_prefetch=0,
            grid=(B, n_c, n_hw),
            in_specs=[pl.BlockSpec((1, tc, thw), lambda b, c, h: (b, c, h))],
            out_specs=pl.BlockSpec((1, tc, 1), lambda b, c, h: (b, c, 0)),
        ),
        compiler_params=pltpu.CompilerParams(
            dimension_semantics=("parallel", "parallel", "arbitrary"),
            vmem_limit_bytes=vmem_limit),
    )(x_flat)

    # 2) Broadcast multiply with the gate computed in-kernel (taps in SMEM);
    #    hw axis is "arbitrary" so the per-(b, c-tile) gate scratch computed at
    #    hw step 0 is valid for the whole hw range on whichever core runs it.
    out_flat = pl.pallas_call(
        _apply_kernel,
        out_shape=jax.ShapeDtypeStruct((B, C, HW), x.dtype),
        grid_spec=pltpu.PrefetchScalarGridSpec(
            num_scalar_prefetch=0,
            grid=(B, n_c, n_hw),
            in_specs=[pl.BlockSpec(memory_space=pltpu.MemorySpace.SMEM),
                      pl.BlockSpec((1, tc, thw), lambda b, c, h: (b, c, h)),
                      pl.BlockSpec((1, C, 1), lambda b, c, h: (b, 0, 0))],
            out_specs=pl.BlockSpec((1, tc, thw), lambda b, c, h: (b, c, h)),
            scratch_shapes=[pltpu.VMEM((1, C, 1), jnp.float32)],
        ),
        compiler_params=pltpu.CompilerParams(
            dimension_semantics=("parallel", "parallel", "arbitrary"),
            vmem_limit_bytes=vmem_limit),
    )(taps, x_flat, pooled)

    return out_flat.reshape(B, C, H, W)


# ----------------------------------------------------------------------------
# Pure-JAX reference (mirrors the PyTorch module, f32 math)
# ----------------------------------------------------------------------------
def _eca_reference(x, conv_w, k_size=3):
    B, C, H, W = x.shape
    pad = (k_size - 1) // 2
    pooled = jnp.mean(x.astype(jnp.float32), axis=(2, 3))          # (B, C)
    pooled_p = jnp.pad(pooled, ((0, 0), (pad, pad)))
    w = conv_w.astype(jnp.float32).reshape(-1)
    y = sum(w[d] * pooled_p[:, d:d + C] for d in range(k_size))    # (B, C)
    gate = jax.nn.sigmoid(y)[:, :, None, None]
    return x.astype(jnp.float32) * gate


if __name__ == "__main__":
    key = jax.random.PRNGKey(0)
    k_x, k_w = jax.random.split(key)

    B, C, H, W = 2, 4, 16, 16
    k_size = 3

    x = jax.random.normal(k_x, (B, C, H, W), dtype=jnp.float32)
    # Deterministic Conv1d(1, 1, k_size, bias=False)-style weight init.
    bound = 1.0 / np.sqrt(k_size)
    conv_w = jax.random.uniform(k_w, (k_size,), dtype=jnp.float32,
                                minval=-bound, maxval=bound)

    ref = _eca_reference(x, conv_w, k_size=k_size)

    # Fused single-read path (default dispatch for this size).
    out = jax.block_until_ready(eca_forward(x, conv_w, k_size=k_size))
    np.testing.assert_allclose(np.asarray(out), np.asarray(ref),
                               rtol=1e-5, atol=1e-5)

    # Streaming (pool + apply) path, forced for coverage.
    out_s = jax.block_until_ready(
        eca_forward(x, conv_w, k_size=k_size, force_streaming=True))
    np.testing.assert_allclose(np.asarray(out_s), np.asarray(ref),
                               rtol=1e-5, atol=1e-5)

    # Streaming path with multi-tile grids (channel + spatial tiling exercised).
    B2, C2, H2, W2 = 2, 16, 16, 16
    x2 = jax.random.normal(k_x, (B2, C2, H2, W2), dtype=jnp.float32)
    ref2 = _eca_reference(x2, conv_w, k_size=k_size)
    out2 = jax.block_until_ready(
        eca_forward(x2, conv_w, k_size=k_size, force_streaming=True,
                    block_cap_bytes=4 << 10))
    np.testing.assert_allclose(np.asarray(out2), np.asarray(ref2),
                               rtol=1e-5, atol=1e-5)

    # bfloat16 I/O path (halves HBM traffic; pooling & gate math stay f32).
    x_bf16 = x.astype(jnp.bfloat16)
    out_bf16 = jax.block_until_ready(eca_forward(x_bf16, conv_w, k_size=k_size))
    ref_bf16 = _eca_reference(x_bf16, conv_w, k_size=k_size)
    np.testing.assert_allclose(np.asarray(out_bf16.astype(jnp.float32)),
                               np.asarray(ref_bf16), rtol=2e-2, atol=2e-2)

    print("KERNEL_OK")
</pallas_src>

<mosaic_0001>
module attributes {stable_mosaic.version = 11 : i64} {
  func.func @_fused_kernel(%arg0: i32, %arg1: memref<3xf32, #tpu.memory_space<smem>>, %arg2: memref<1x4x256xf32, #tpu.memory_space<vmem>>, %arg3: memref<1x4x256xf32, #tpu.memory_space<vmem>>) attributes {dimension_semantics = [#tpu.dimension_semantics<parallel>], iteration_bounds = array<i64: 2>, scalar_prefetch = 0 : i64, scratch_operands = 0 : i64, tpu.core_type = #tpu.core_type<tc>, window_params = [{transform_indices = @transform_0, window_bounds = array<i64: 3>}, {transform_indices = @transform_1, window_bounds = array<i64: 1, 4, 256>}, {transform_indices = @transform_2, window_bounds = array<i64: 1, 4, 256>}]} {
    %c0 = arith.constant 0 : index
    %c0_0 = arith.constant 0 : index
    %c0_1 = arith.constant 0 : index
    %0 = vector.load %arg2[%c0, %c0_0, %c0_1] : memref<1x4x256xf32, #tpu.memory_space<vmem>>, vector<1x4x256xf32>
    %1 = vector.shape_cast %0 : vector<1x4x256xf32> to vector<4x256xf32>
    %cst = arith.constant dense<0.000000e+00> : vector<4xf32>
    %2 = vector.multi_reduction <add>, %1, %cst [1] : vector<4x256xf32> to vector<4xf32>
    %3 = vector.shape_cast %2 : vector<4xf32> to vector<4x1xf32>
    %cst_2 = arith.constant 0.000000e+00 : f32
    %4 = vector.broadcast %cst_2 : f32 to vector<1x1xf32>
    %5 = tpu.concatenate %4, %3, %4 in 0 : vector<1x1xf32>, vector<4x1xf32>, vector<1x1xf32> -> vector<6x1xf32>
    %c0_3 = arith.constant 0 : index
    %6 = memref.load %arg1[%c0_3] : memref<3xf32, #tpu.memory_space<smem>>
    %7 = vector.extract_strided_slice %5 {offsets = [0, 0], sizes = [4, 1], strides = [1, 1]} : vector<6x1xf32> to vector<4x1xf32>
    %8 = vector.broadcast %6 : f32 to vector<4x1xf32>
    %9 = arith.mulf %8, %7 : vector<4x1xf32>
    %c1 = arith.constant 1 : index
    %10 = memref.load %arg1[%c1] : memref<3xf32, #tpu.memory_space<smem>>
    %11 = vector.extract_strided_slice %5 {offsets = [1, 0], sizes = [4, 1], strides = [1, 1]} : vector<6x1xf32> to vector<4x1xf32>
    %12 = vector.broadcast %10 : f32 to vector<4x1xf32>
    %13 = arith.mulf %12, %11 : vector<4x1xf32>
    %14 = arith.addf %9, %13 : vector<4x1xf32>
    %c2 = arith.constant 2 : index
    %15 = memref.load %arg1[%c2] : memref<3xf32, #tpu.memory_space<smem>>
    %16 = vector.extract_strided_slice %5 {offsets = [2, 0], sizes = [4, 1], strides = [1, 1]} : vector<6x1xf32> to vector<4x1xf32>
    %17 = vector.broadcast %15 : f32 to vector<4x1xf32>
    %18 = arith.mulf %17, %16 : vector<4x1xf32>
    %19 = arith.addf %14, %18 : vector<4x1xf32>
    %20 = arith.negf %19 : vector<4x1xf32>
    %21 = math.exp %20 : vector<4x1xf32>
    %cst_4 = arith.constant 1.000000e+00 : f32
    %22 = vector.broadcast %cst_4 : f32 to vector<4x1xf32>
    %23 = arith.addf %22, %21 : vector<4x1xf32>
    %24 = arith.divf %22, %23 : vector<4x1xf32>
    %c0_5 = arith.constant 0 : index
    %c0_6 = arith.constant 0 : index
    %c0_7 = arith.constant 0 : index
    %25 = vector.load %arg2[%c0_5, %c0_6, %c0_7] : memref<1x4x256xf32, #tpu.memory_space<vmem>>, vector<1x4x256xf32>
    %26 = vector.shape_cast %25 : vector<1x4x256xf32> to vector<4x256xf32>
    %27 = vector.broadcast %24 : vector<4x1xf32> to vector<4x256xf32>
    %28 = arith.mulf %26, %27 : vector<4x256xf32>
    %c0_8 = arith.constant 0 : index
    %c0_9 = arith.constant 0 : index
    %c0_10 = arith.constant 0 : index
    %29 = vector.load %arg3[%c0_8, %c0_9, %c0_10] : memref<1x4x256xf32, #tpu.memory_space<vmem>>, vector<1x4x256xf32>
    %30 = vector.shape_cast %29 : vector<1x4x256xf32> to vector<4x256xf32>
    %31 = vector.shape_cast %28 : vector<4x256xf32> to vector<1x4x256xf32>
    tpu.vector_store %arg3[%c0_8, %c0_9, %c0_10], %31 {strides = array<i32>} : memref<1x4x256xf32, #tpu.memory_space<vmem>>, vector<1x4x256xf32>,
    return
  }
  func.func @transform_0(%arg0: i32) -> i32 {
    %c0_i32 = arith.constant 0 : i32
    %c0_i32_0 = arith.constant 0 : i32
    return %c0_i32 : i32
  }
  func.func @transform_1(%arg0: i32) -> (i32, i32, i32) {
    %c0_i32 = arith.constant 0 : i32
    %c0_i32_0 = arith.constant 0 : i32
    %c0_i32_1 = arith.constant 0 : i32
    return %arg0, %c0_i32, %c0_i32_0 : i32, i32, i32
  }
  func.func @transform_2(%arg0: i32) -> (i32, i32, i32) {
    %c0_i32 = arith.constant 0 : i32
    %c0_i32_0 = arith.constant 0 : i32
    %c0_i32_1 = arith.constant 0 : i32
    return %arg0, %c0_i32, %c0_i32_0 : i32, i32, i32
  }
}

</mosaic_0001>

<bundles_post_ra>
// kernel: tpu_custom_call.1
= control target key start
LH: loop header
LB: loop body
LE: loop exit
PB: predicated region body
PF: predicated region fallthrough
CT: control target
= control target key end

     0   :  { %7 = vsyncpa [#allocation5], 0  ;;  %s704_s0 = inlined_call_operand.hbm [shape: f32[3], index: 0, kind: input, shape index: {}]   ;;  %s705_s1 = inlined_call_operand.hbm [shape: f32[2,4,256], index: 1, kind: input, shape index: {}]   ;;  %s706_s2 = inlined_call_operand.hbm [shape: f32[2,4,256], index: 2, kind: output, shape index: {}]  }
   0x1   :  { %8 = vsyncpa [#allocation3], 0 }
   0x2   :  { %10 = vsyncpa [#allocation3 + $0x1], 0 }
   0x3   :  { %11 = vsyncpa [#allocation4], 0 }
   0x4   :  { %13 = vsyncpa [#allocation4 + $0x1], 0  ;;  %s562_s9 = smov 0   ;;  %s564_s10 = smov 0  }
   0x5   :  { %s566_s11 = smov 0   ;;  %s568_s12 = smov 0  }
   0x6 LB: > { %s583_s13 = sadd.s32 4294967295, %s542_s12   ;;  %s342_s14 = sadd.s32 4294967294, %s542_s12   ;;  %s542_s12 = sphi %s568_s12, %s716_s12   ;;  %s538_s11 = sphi %s566_s11, %s715_s11   ;;  %s534_s10 = sphi %s564_s10, %s714_s10   ;;  %s530_s9 = sphi %s562_s9, %s713_s9  }
   0x7   : > { %p60_p0 = scmp.ne.s32.totalorder %s534_s10, %s530_s9  ;;  %p61_p1 = scmp.eq.s32.totalorder %s583_s13, 0 }
   0x8   : > { %p84_p2 = scmp.eq.s32.totalorder %s583_s13, 1  ;;  %p90_p3 = scmp.eq.s32.totalorder %s342_s14, 1 }
   0x9   : > { %p592_p4 = por %p61_p1, %p60_p0  ;;  %p343_p5 = scmp.ge.s32.totalorder %s542_s12, 1 }
   0xa   : > { %p597_p6 = por %p90_p3, %p60_p0  ;;  %p97_p7 = scmp.lt.s32.totalorder %s542_s12, 3 }
   0xb   : > { %s109_s19 = sshll.u32 %s704_s0, 4  ;;  %s613_s21 = sadd.s32 1, %s542_s12   ;;  %s110_s19 = int_to_ptr.hbm [resolvable:$true] %s109_s19 }
   0xc   : > { %p605_p8 = pnand %p343_p5, %p97_p7  ;;  %s44_s22 = ssub.s32 %s542_s12, %s613_s21 }
   0xd   : > { %p45_p12 = scmp.eq.s32.totalorder %s44_s22, 0  ;;  %s47_s23 = sadd.s32 1, %s538_s11 }
   0xe   : > { %p371_p10 = pneg %p605_p8  ;;  %p54_p13 = scmp.ne.s32.totalorder %s538_s11, %s534_s10 }
   0xf   : > { %s544_s24 = smov [#allocation2]   ;;  %p55_p0 = scmp.eq.s32.totalorder %s542_s12, 0 }
  0x10   : > { %p372_p11 = pnand %p371_p10, %p61_p1  ;;  %p628_p3 = por %p84_p2, %p54_p13 }
  0x11   : > { %s623_s25 = scalar_select %p45_p12, %s538_s11, %s47_s23  }
  0x12   : > { %374 = dma.hbm_to_smem (!%p372_p11), %s110_s19, 16, %s544_s24, [#allocation5]  }
  0x13   : > { %s120_s27 = sand.u32 1, %s538_s11   ;;  %p56_p5 = por %p55_p0, %p54_p13 }
  0x14   : > { %p384_p7 = scmp.lt.s32.totalorder %s542_s12, 2  ;;  %s346_s28 = sshll.u32 %s120_s27, 3 }
  0x15   : > { %s361_s29 = sshll.u32 %s542_s12, 3  ;;  %s124_s6 = scalar_lea.vmem [#allocation6], %s346_s28 }
  0x16   : > { %s129_s4 = scalar_lea.hbm %s705_s1, %s361_s29  ;;  %s133_s7 = sshll.u32 %s124_s6, 4  ;;  %s134_s7 = int_to_ptr.vmem [resolvable:$true] %s133_s7 }
  0x17   : > { %s131_s5 = sshll.u32 %s129_s4, 4  ;;  %p638_p10 = pnand %p384_p7, %p56_p5  ;;  %s132_s5 = int_to_ptr.hbm [resolvable:$true] %s131_s5 }
  0x18   : > { %s121_s14 = scalar_lea.sflag [#allocation3], %s120_s27  ;;  %s442_s17 = sshra.s32 %s132_s5, 4  ;;  %s443_s17 = int_to_ptr.hbm [resolvable:$true] %s442_s17 }
  0x19   : > { %s444_s18 = scalar_lea.hbm %s443_s17, 8  ;;  %p446_p11 = pneg %p638_p10 }
  0x1a   : > { %p445_p2 = scmp.ne.s32.totalorder %s443_s17, %s444_s18  ;;  %s449_s23 = scalar_lea.hbm %s705_s1, 16 }
  0x1b   : > { %p450_p0 = scmp.lt.s32.totalorder %s443_s17, %s705_s1  ;;  %p451_p5 = scmp.lt.s32.totalorder %s449_s23, %s444_s18 }
  0x1c   : > { %p447_p12 = pnand %p446_p11, %p445_p2 }
  0x1d   : > { %p452_p7 = por %p451_p5, %p450_p0 }
  0x1e   : > { %p448_p13 = pneg %p447_p12 }
  0x20   : > { %p453_p9 = pnand %p452_p7, %p448_p13 }
  0x22   : > { %456 = shalt.err (!%p453_p9)
}
  0x23   : > { %378 = dma.hbm_to_vmem [thread:$0]  (!%p638_p10), %s132_s5, 128, %s134_s7, %s121_s14  }
  0x24   : > { %142 = sbr.rel (%p605_p8) target bundleno = 338 (0x152), region = 28 }
  0x29   : > { %517 = dma.done.wait (%p61_p1), [#allocation5], 16  }
  0x2a   : > { %519 = vsyncadd (%p61_p1), [#allocation5], 4294967280  ;;  %s659_s27 = sand.u32 1, %s534_s10  }
  0x2b   : > { %s351_s29 = sshll.u32 %s659_s27, 3  ;;  %s150_s30 = scalar_lea.sflag [#allocation3], %s659_s27 }
  0x2c   : > { %s153_s3 = scalar_lea.vmem [#allocation6], %s351_s29 }
  0x2d   : > { %521 = dma.done.wait (%p592_p4), %s150_s30, 128  }
  0x2e   : > { %523 = vsyncadd (%p592_p4), %s150_s30, 4294967168 }
  0x2f   : > { %159 = sfence }
  0x30   : > { %v176_v0 = vld [vmem:[%s153_s3] sm:$0xff]  ;;  %vm183_vm0 = vcmask 1043456   ;;  %s353_s20 = sld [smem:[#allocation2 + $0x1]]  ;;  %v545_v6 = vmov 0   ;;  %vm192_vm1 = vcmask 1040384   ;;  %vm194_vm2 = vcmask 1044480  }
  0x31   : > { %178 = vst [vmem:[#allocation1] ss:$2 sm:$0xff] %v176_v0  ;;  %422 = vset.pattern.permute.xlu0 %v545_v6  ;;  %s354_s4 = sld [smem:[#allocation2 + $0x2]]  ;;  %v546_v34 = vmov 839922192   ;;  %s362_s15 = sshll.u32 %s583_s13, 3 }
  0x32   : > { %s196_s5 = sld [smem:[#allocation2]]  ;;  %v237_v35 = vunpack.c.l.s4 %v546_v34  ;;  %s255_s8 = scalar_lea.hbm %s706_s2, %s362_s15 }
  0x33   : > { %s175_s14 = scalar_lea.vmem [#allocation7], %s351_s29  ;;  %s259_s18 = sshll.u32 %s255_s8, 4  ;;  %s260_s18 = int_to_ptr.hbm [resolvable:$true] %s259_s18 }
  0x34   : > { %v238_v36 = vunpack.c.0.s8 %v237_v35  ;;  %s257_s17 = sshll.u32 %s175_s14, 4  ;;  %s244_s19 = scalar_lea.sflag [#allocation4], %s659_s27  ;;  %s258_s17 = int_to_ptr.vmem [resolvable:$true] %s257_s17 }
  0x35   : > { %s486_s22 = sshra.s32 %s260_s18, 4  ;;  %s492_s28 = scalar_lea.hbm %s706_s2, 16  ;;  %s487_s22 = int_to_ptr.hbm [resolvable:$true] %s486_s22 }
  0x36   : > { %v200_v9 = vstv %s353_s20  ;;  %s488_s13 = scalar_lea.hbm %s487_s22, 8  ;;  %p493_p9 = scmp.lt.s32.totalorder %s487_s22, %s706_s2 }
  0x37   : > { %v207_v10 = vstv %s354_s4  ;;  %p489_p1 = scmp.ne.s32.totalorder %s487_s22, %s488_s13  ;;  %p494_p10 = scmp.lt.s32.totalorder %s492_s28, %s488_s13 }
  0x38   : > { %v179_v1 = vld.sshfl [vmem:[#allocation1] sm:$0xff pattern:$0x75316420]  ;;  %v180_v2 = vld.sshfl [vmem:[#allocation1 + $0x8] sm:$0xff pattern:$0x75316420]  ;;  %v197_v12 = vstv %s196_s5 }
  0x39   : > { %v184_v3 = vsel %vm183_vm0, %v179_v1, 0.0  ;;  %v185_v4 = vsel %vm183_vm0, %v180_v2, 0.0  ;;  %p490_p4 = pnand %p489_p1, %p628_p3  ;;  %p495_p2 = por %p494_p10, %p493_p9 }
  0x3a   : > { %v186_v5 = vadd.f32 %v185_v4, %v184_v3 }
  0x3b   : > { %p491_p8 = pneg %p490_p4 }
  0x3c   : > { %187 = vadd.xlane.f32.xlu0 %v186_v5 }
  0x3d   : > { %p496_p11 = pnand %p495_p2, %p491_p8 }
  0xaf   : > { %v188_v7 = vpop.xlane.xlu0 %187 }
  0xb0   : > { %v190_v8 = vrot.slane %v188_v7, 7 }
  0xb2   : > { %v193_v11 = vsel %vm192_vm1, 0.0, %v190_v8 }
  0xb3   : > { %v195_v13 = vsel %vm194_vm2, %v193_v11, 0.0 }
  0xb4   : > { %v201_v14 = vmul.f32 %v200_v9, %v195_v13  ;;  %v208_v15 = vmul.f32 %v207_v10, %v195_v13  ;;  %v198_v16 = vmul.f32 %v197_v12, %v195_v13 }
  0xb6   : > { %v203_v17 = vrot.slane %v201_v14, 1  ;;  %v210_v19 = vrot.slane %v208_v15, 2 }
  0xb8   : > { %v205_v18 = vadd.f32 %v203_v17, %v198_v16 }
  0xba   : > { %v212_v20 = vadd.f32 %v210_v19, %v205_v18 }
  0xbc   : > { %v355_v21 = vmul.f32 -1.442695, %v212_v20 }
  0xbe   : > { %423 = vpow2.f32 %v355_v21 }
  0xc4   : > { %v424_v22 = vpop.eup %423 }
  0xc5   : > { %v216_v23 = vadd.f32 1.0, %v424_v22 }
  0xc7   : > { %425 = vrcp.f32 %v216_v23  ;;  %v228_v27 = vand.u32 2147483648, %v216_v23  ;;  %v226_v29 = vand.u32 2147483647, %v216_v23  ;;  %vm222_vm4 = vweird.f32 %v216_v23 }
  0xc9   : > { %v229_v31 = vor.u32 1.1754944e-38, %v228_v27  ;;  %vm227_vm6 = vcmp.eq.f32.partialorder %v226_v29, 8.507059e+37 }
  0xcd   : > { %v426_v24 = vpop.eup %425 }
  0xce   : > { %v218_v25 = vmul.f32 %v426_v24, %v216_v23  ;;  %vm223_vm3 = vweird.f32 %v426_v24 }
  0xcf   : > { %vm224_vm5 = vmor %vm222_vm4, %vm223_vm3 }
  0xd0   : > { %v219_v26 = vsub.f32 1.0, %v218_v25 }
  0xd2   : > { %v220_v28 = vmul.f32 %v426_v24, %v219_v26 }
  0xd4   : > { %v221_v30 = vadd.f32 %v426_v24, %v220_v28 }
  0xd6   : > { %v225_v32 = vsel %vm224_vm5, %v426_v24, %v221_v30 }
  0xd7   : > { %v230_v33 = vsel %vm227_vm6, %v229_v31, %v225_v32 }
  0xd8   : > { %234 = vperm.xlu0 %422, %v230_v33  }
 0x14a   : > { %v235_v37 = vpop.permute.xlu0 %234 }
 0x14b   : > { %v239_v38 = vperm.slane %v235_v37, %v238_v36 }
 0x14d   : > { %v241_v39 = vmul.f32 %v239_v38, %v176_v0 }
 0x14f   : > { %242 = vst [vmem:[%s175_s14] sm:$0xff] %v241_v39 }
 0x150   : > { %499 = shalt.err (!%p496_p11)
}
 0x151   : > { %369 = dma.vmem_to_hbm [thread:$0]  (%p628_p3), %s258_s17, 128, %s260_s18, %s244_s19  }
 0x152 PF: > { %s271_s27 = sand.u32 1, %s530_s9   ;;  %p712_p12 = scmp.ge.s32.totalorder %s542_s12, 2 }
 0x153   : > { %s272_s3 = scalar_lea.sflag [#allocation4], %s271_s27 }
 0x154   : > { %p380_p13 = pnand %p712_p12, %p597_p6 }
 0x156   : > { %p381_p0 = pneg %p380_p13 }
 0x158   : > { %525 = dma.done.wait (%p381_p0), %s272_s3, 128  }
 0x159   : > { %527 = vsyncadd (%p381_p0), %s272_s3, 4294967168  ;;  %p16_p5 = scmp.ge.s32.totalorder %s613_s21, 4   ;;  %s713_s9 = smov %s534_s10 }
 0x15a   : > { %s714_s10 = smov %s538_s11  ;;  %s715_s11 = smov %s623_s25 }
 0x15b   : > { %s716_s12 = smov %s613_s21  ;;  %18 = sbr.rel (!%p16_p5) target bundleno = 6 (0x6), region = 78 }
 0x160   :  { %278 = vsyncpa [#allocation3], 1 }
 0x161   :  { %280 = vsyncpa [#allocation3 + $0x1], 1 }
 0x162   :  { %281 = vsyncpa [#allocation4], 1 }
 0x163   :  { %283 = vsyncpa [#allocation4 + $0x1], 1 }
 0x164   :  { %284 = vsyncpa [#allocation5], 1 }
 0x165   :  { %286 = vsyncpa [#allocation5 + $0x1], 1 }

</bundles_post_ra>
